<compile_context>
chip_gen: v5e
topology: v5e:2x2
jax: 0.10.0
libtpu: 0.0.40
codegen_flags: <defaults>
</compile_context>

<pallas_src>
import functools

import jax
import jax.numpy as jnp
from jax.experimental import pallas as pl
from jax.experimental.pallas import tpu as pltpu

_LANE = 128
_TARGET_BLOCK_BYTES = 8 * 1024 * 1024
_VMEM_LIMIT_BYTES = 48 * 1024 * 1024


def _round_up(a, b):
    return -(-a // b) * b


def _round_down(a, b):
    return (a // b) * b


def _choose_tk(hw, cap):
    """Reduction tile: a 128-multiple <= cap; prefer a divisor of hw (no mask)."""
    best = _round_down(cap, _LANE)
    d = best
    while d >= 512:
        if hw % d == 0:
            return d
        d -= _LANE
    return best


def _gap_single_kernel(x_ref, o_ref, *, inv_hw):
    # One reduction step per row tile: x_ref is (tm, HW).
    x = x_ref[...].astype(jnp.float32)
    o_ref[...] = (jnp.sum(x, axis=1, keepdims=True) * inv_hw).astype(o_ref.dtype)


def _gap_multi_kernel(x_ref, o_ref, acc_ref, *, hw, tk, inv_hw, ragged):
    # x_ref: (tm, tk) tile of the (M, HW) row matrix, tk is a 128-multiple.
    # o_ref: (tm, 1) resident output block (same block across the k axis).
    # acc_ref: (tm, 128) lane-dense f32 accumulator scratch.
    k = pl.program_id(1)
    nk = pl.num_programs(1)

    @pl.when(k == 0)
    def _init():
        acc_ref[...] = jnp.zeros_like(acc_ref)

    def _accumulate(x):
        # Lane-group partial sums: pure vadds, no cross-lane (XLU) work here.
        partial = x[:, 0:_LANE]
        for c in range(1, tk // _LANE):
            partial = partial + x[:, c * _LANE:(c + 1) * _LANE]
        acc_ref[...] += partial

    if ragged:
        # Mask only on the last spatial tile; steady state stays mask-free.
        @pl.when(k < nk - 1)
        def _steady():
            _accumulate(x_ref[...].astype(jnp.float32))

        @pl.when(k == nk - 1)
        def _tail():
            x = x_ref[...].astype(jnp.float32)
            col = k * tk + jax.lax.broadcasted_iota(jnp.int32, x.shape, 1)
            _accumulate(jnp.where(col < hw, x, 0.0))
    else:
        _accumulate(x_ref[...].astype(jnp.float32))

    @pl.when(k == nk - 1)
    def _finalize():
        row_sum = jnp.sum(acc_ref[...], axis=1, keepdims=True)  # single XLU reduce
        o_ref[...] = (row_sum * inv_hw).astype(o_ref.dtype)


def global_avg_pool2d(x):
    """x: (N, C, H, W) -> (N, C) mean over spatial dims (matches the nn.Module)."""
    N, C, H, W = x.shape
    HW = H * W
    M = N * C
    if M == 0 or HW == 0:
        return jnp.zeros((N, C), x.dtype)

    x2 = x.reshape(M, HW)  # zero-copy view of NCHW (row-major); never padded/copied
    itemsize = jnp.dtype(x.dtype).itemsize
    sub = 8 * max(1, 4 // itemsize)        # sublane packing: 8 f32 / 16 bf16 / 32 int8
    inv_hw = 1.0 / float(HW)

    # Spatial tile cap: ~32 KiB of contiguous lanes per row chunk.
    tk_cap = max(_LANE, _round_down(32 * 1024 // itemsize, _LANE))

    cost = pl.CostEstimate(
        flops=M * HW,
        transcendentals=0,
        bytes_accessed=M * HW * itemsize + M * itemsize,
    )

    if HW <= tk_cap:
        # ---------- single reduction step per row tile ----------
        # VMEM footprint per row is lane-padded to a 128 multiple.
        phys_row_bytes = _round_up(HW, _LANE) * itemsize
        tm_vmem = max(sub, _round_down(_TARGET_BLOCK_BYTES // phys_row_bytes, sub))
        if M <= sub:
            tm = M  # block dim == full array dim (allowed by the (8,128) rule)
        else:
            # >=2 row tiles so the "parallel" axis can use both v7x TensorCores.
            tm = min(4096, tm_vmem, _round_up(-(-M // 2), sub))
            tm = max(tm, sub)

        out2 = pl.pallas_call(
            functools.partial(_gap_single_kernel, inv_hw=inv_hw),
            out_shape=jax.ShapeDtypeStruct((M, 1), x.dtype),
            grid_spec=pltpu.PrefetchScalarGridSpec(
                num_scalar_prefetch=0,
                grid=(pl.cdiv(M, tm),),
                in_specs=[pl.BlockSpec((tm, HW), lambda i: (i, 0))],
                out_specs=pl.BlockSpec((tm, 1), lambda i: (i, 0)),
            ),
            compiler_params=pltpu.CompilerParams(
                dimension_semantics=("parallel",),
                vmem_limit_bytes=_VMEM_LIMIT_BYTES,
            ),
            cost_estimate=cost,
        )(x2)
    else:
        # ---------- tiled reduction over the spatial axis ----------
        tk = _choose_tk(HW, tk_cap)            # 128-multiple; divisor of HW if possible
        ragged = (HW % tk) != 0
        tm_vmem = max(sub, _round_down(_TARGET_BLOCK_BYTES // (tk * itemsize), sub))
        if M <= sub:
            tm = M
        else:
            tm = min(1024, tm_vmem, _round_up(-(-M // 2), sub))
            tm = max(tm, sub)

        out2 = pl.pallas_call(
            functools.partial(
                _gap_multi_kernel, hw=HW, tk=tk, inv_hw=inv_hw, ragged=ragged
            ),
            out_shape=jax.ShapeDtypeStruct((M, 1), x.dtype),
            grid_spec=pltpu.PrefetchScalarGridSpec(
                num_scalar_prefetch=0,
                grid=(pl.cdiv(M, tm), pl.cdiv(HW, tk)),  # reduction axis last
                in_specs=[pl.BlockSpec((tm, tk), lambda i, k: (i, k))],
                out_specs=pl.BlockSpec((tm, 1), lambda i, k: (i, 0)),
                scratch_shapes=[pltpu.VMEM((tm, _LANE), jnp.float32)],
            ),
            compiler_params=pltpu.CompilerParams(
                dimension_semantics=("parallel", "arbitrary"),
                vmem_limit_bytes=_VMEM_LIMIT_BYTES,
            ),
            cost_estimate=cost,
        )(x2)

    return out2.reshape(N, C)


if __name__ == "__main__":
    key = jax.random.PRNGKey(0)
    gap = jax.jit(global_avg_pool2d)

    # Primary shape from the module spec: (N, C, H, W) = (2, 4, 16, 16).
    x = jax.random.uniform(key, (2, 4, 16, 16), jnp.float32)
    out = jax.block_until_ready(gap(x))
    assert out.shape == (2, 4), out.shape
    assert out.dtype == jnp.float32
    ref = jnp.mean(x, axis=(2, 3))
    assert jnp.allclose(out, ref, atol=1e-5, rtol=1e-5), float(
        jnp.max(jnp.abs(out - ref))
    )

    # Ragged row count + non-128 spatial extent (7x7 pooling head style).
    x2 = jax.random.uniform(jax.random.PRNGKey(1), (3, 5, 7, 7), jnp.float32)
    out2 = jax.block_until_ready(gap(x2))
    ref2 = jnp.mean(x2, axis=(2, 3))
    assert jnp.allclose(out2, ref2, atol=1e-5, rtol=1e-5), float(
        jnp.max(jnp.abs(out2 - ref2))
    )

    # Large spatial extent exercising the tiled-reduction path with a masked
    # last spatial tile (HW = 96*97 = 9312, not a multiple of the chosen tk).
    x3 = jax.random.uniform(jax.random.PRNGKey(2), (1, 2, 96, 97), jnp.float32)
    out3 = jax.block_until_ready(gap(x3))
    ref3 = jnp.mean(x3, axis=(2, 3))
    assert jnp.allclose(out3, ref3, atol=1e-5, rtol=1e-5), float(
        jnp.max(jnp.abs(out3 - ref3))
    )

    print("KERNEL_OK")
</pallas_src>

<mosaic_0001>
module attributes {stable_mosaic.version = 11 : i64} {
  func.func @_gap_single_kernel(%arg0: i32, %arg1: memref<8x256xf32, #tpu.memory_space<vmem>>, %arg2: memref<8x1xf32, #tpu.memory_space<vmem>>) attributes {dimension_semantics = [#tpu.dimension_semantics<parallel>], iteration_bounds = array<i64: 1>, scalar_prefetch = 0 : i64, scratch_operands = 0 : i64, tpu.core_type = #tpu.core_type<tc>, window_params = [{transform_indices = @transform_0, window_bounds = array<i64: 8, 256>}, {transform_indices = @transform_1, window_bounds = array<i64: 8, 1>}]} {
    %c0 = arith.constant 0 : index
    %c0_0 = arith.constant 0 : index
    %0 = vector.load %arg1[%c0, %c0_0] : memref<8x256xf32, #tpu.memory_space<vmem>>, vector<8x256xf32>
    %cst = arith.constant dense<0.000000e+00> : vector<8xf32>
    %1 = vector.multi_reduction <add>, %0, %cst [1] : vector<8x256xf32> to vector<8xf32>
    %2 = vector.shape_cast %1 : vector<8xf32> to vector<8x1xf32>
    %cst_1 = arith.constant 3.906250e-03 : f32
    %3 = vector.broadcast %cst_1 : f32 to vector<8x1xf32>
    %4 = arith.mulf %2, %3 : vector<8x1xf32>
    %c0_2 = arith.constant 0 : index
    %c0_3 = arith.constant 0 : index
    %5 = vector.load %arg2[%c0_2, %c0_3] : memref<8x1xf32, #tpu.memory_space<vmem>>, vector<8x1xf32>
    tpu.vector_store %arg2[%c0_2, %c0_3], %4 {strides = array<i32>} : memref<8x1xf32, #tpu.memory_space<vmem>>, vector<8x1xf32>,
    return
  }
  func.func @transform_0(%arg0: i32) -> (i32, i32) {
    %c0_i32 = arith.constant 0 : i32
    %c0_i32_0 = arith.constant 0 : i32
    return %arg0, %c0_i32 : i32, i32
  }
  func.func @transform_1(%arg0: i32) -> (i32, i32) {
    %c0_i32 = arith.constant 0 : i32
    %c0_i32_0 = arith.constant 0 : i32
    return %arg0, %c0_i32 : i32, i32
  }
}

</mosaic_0001>

<bundles_post_ra>
// kernel: global_avg_pool2d.1
= control target key start
LH: loop header
LB: loop body
LE: loop exit
PB: predicated region body
PF: predicated region fallthrough
CT: control target
= control target key end

     0   :  { %vm14_vm0 = vcmask 7168   ;;  %s39_s0 = inlined_call_operand.vmem [shape: f32[8,256], index: 0, kind: input, shape index: {}]   ;;  %s40_s1 = inlined_call_operand.vmem [shape: f32[8,1], index: 1, kind: output, shape index: {}]  }
   0x1   :  { %v8_v0 = vld [vmem:[%s39_s0] sm:$0xff]  ;;  %v9_v1 = vld [vmem:[%s39_s0 + $0x8] sm:$0xff] }
   0x2   :  { %v10_v2 = vadd.f32 %v9_v1, %v8_v0 }
   0x4   :  { %11 = vadd.xlane.f32.xlu0 %v10_v2 }
  0x77   :  { %v12_v3 = vpop.xlane.xlu0 %11 }
  0x78   :  { %v13_v4 = vmul.f32 0.00390625, %v12_v3 }
  0x7a   :  { %15 = vst.msk [vmem:[%s40_s1] sm:$0xff] %vm14_vm0, %v13_v4 }

</bundles_post_ra>
